<compile_context>
chip_gen: v7x
topology: tpu7x:2x2x1
jax: 0.10.0
libtpu: 0.0.40
codegen_flags: <defaults>
</compile_context>

<pallas_src>
import functools
import numpy as np

import jax
import jax.numpy as jnp
from jax import lax
from jax.experimental import pallas as pl
from jax.experimental.pallas import tpu as pltpu

# ---------------- problem sizes (small, consistent with the module) ----------
NUM_REGIONS = 185                         # CC200 regions after dropping first 15
SUBNET_COUNTS = [30, 25, 28, 27, 20, 30, 25]          # 7 Yeo networks, sums to 185
REGION_START = list(np.cumsum([0] + SUBNET_COUNTS[:-1]))
SUBNET_FLAT_DIMS = [n * (n - 1) // 2 for n in SUBNET_COUNTS]   # upper-tri corr dims
SUBNET_PAD = max(SUBNET_FLAT_DIMS)
NUM_SUBNETS = len(SUBNET_COUNTS)
INPUT_DIM = NUM_REGIONS
HIDDEN = 64
EMBD = 32
HEADS = 4
LAYERS = 2
BATCH = 2

# ---------------- static region -> subnetwork tables (baked at trace time) ---
_r2s = np.zeros(NUM_REGIONS, dtype=np.int32)
_starts = REGION_START + [NUM_REGIONS]
for _s in range(NUM_SUBNETS):
    _r2s[_starts[_s]:_starts[_s + 1]] = _s
_E = np.zeros((NUM_REGIONS, NUM_SUBNETS), np.float32)   # one-hot region->subnet
_E[np.arange(NUM_REGIONS), _r2s] = 1.0
_ET = np.ascontiguousarray(_E.T)
_CROSS_MASK = (_r2s[:, None] != _r2s[None, :]).astype(np.float32)


# ============================ Pallas kernels =================================

def _mlp2_kernel(x_ref, w1_ref, b1_ref, w2_ref, b2_ref, o_ref, *, residual):
    """Fused Linear -> ReLU -> Linear (+ optional residual); hidden stays in VMEM."""
    x = x_ref[0]                                                    # (M, Din)
    h = jnp.dot(x, w1_ref[...], preferred_element_type=jnp.float32) + b1_ref[...]
    h = jnp.maximum(h, 0.0)
    y = jnp.dot(h, w2_ref[...], preferred_element_type=jnp.float32) + b2_ref[...]
    if residual:
        y = y + x
    o_ref[0] = y


def mlp2(x, w1, b1, w2, b2, residual=False):
    """x: (B, M, Din) -> (B, M, Dout). One fused kernel per batch element."""
    B, M, Din = x.shape
    Dh = w1.shape[1]
    Dout = w2.shape[1]
    return pl.pallas_call(
        functools.partial(_mlp2_kernel, residual=residual),
        grid=(B,),
        in_specs=[
            pl.BlockSpec((1, M, Din), lambda b: (b, 0, 0)),
            pl.BlockSpec((Din, Dh), lambda b: (0, 0)),
            pl.BlockSpec((1, Dh), lambda b: (0, 0)),
            pl.BlockSpec((Dh, Dout), lambda b: (0, 0)),
            pl.BlockSpec((1, Dout), lambda b: (0, 0)),
        ],
        out_specs=pl.BlockSpec((1, M, Dout), lambda b: (b, 0, 0)),
        out_shape=jax.ShapeDtypeStruct((B, M, Dout), jnp.float32),
        compiler_params=pltpu.CompilerParams(dimension_semantics=("parallel",)),
    )(x, w1, b1, w2, b2)


def _subnet_mlp_kernel(x_ref, w1_ref, b1_ref, w2_ref, b2_ref, o_ref):
    """Per-subnet fused MLP on zero-padded inputs/weights (padding rows are 0)."""
    x = x_ref[0]                                                    # (B, Dpad)
    h = jnp.dot(x, w1_ref[0], preferred_element_type=jnp.float32) + b1_ref[0]
    h = jnp.maximum(h, 0.0)
    o_ref[0] = jnp.dot(h, w2_ref[0], preferred_element_type=jnp.float32) + b2_ref[0]


def subnet_mlps(x_pack, w1, b1, w2, b2):
    """x_pack: (S, B, Dpad) -> (S, B, EMBD); grid over the 7 subnetworks."""
    S, B, Dpad = x_pack.shape
    Dh = w1.shape[2]
    Dout = w2.shape[2]
    return pl.pallas_call(
        _subnet_mlp_kernel,
        grid=(S,),
        in_specs=[
            pl.BlockSpec((1, B, Dpad), lambda s: (s, 0, 0)),
            pl.BlockSpec((1, Dpad, Dh), lambda s: (s, 0, 0)),
            pl.BlockSpec((1, 1, Dh), lambda s: (s, 0, 0)),
            pl.BlockSpec((1, Dh, Dout), lambda s: (s, 0, 0)),
            pl.BlockSpec((1, 1, Dout), lambda s: (s, 0, 0)),
        ],
        out_specs=pl.BlockSpec((1, B, Dout), lambda s: (s, 0, 0)),
        out_shape=jax.ShapeDtypeStruct((S, B, Dout), jnp.float32),
        compiler_params=pltpu.CompilerParams(dimension_semantics=("parallel",)),
    )(x_pack, w1, b1, w2, b2)


def _mhsa_kernel(x_ref, wqkv_ref, bqkv_ref, wo_ref, bo_ref, g_ref, be_ref,
                 out_ref, attn_ref, ctx_scr, *, num_heads):
    x = x_ref[0]                                                    # (M, D)
    M, D = x.shape
    hs = D // num_heads

    # LayerNorm (biased variance, eps=1e-5, matches nn.LayerNorm)
    mean = jnp.mean(x, axis=-1, keepdims=True)
    var = jnp.mean((x - mean) ** 2, axis=-1, keepdims=True)
    norm = (x - mean) * lax.rsqrt(var + 1e-5)
    norm = norm * g_ref[...] + be_ref[...]

    # fused q/k/v projection: one (M, D) @ (D, 3D) matmul
    qkv = jnp.dot(norm, wqkv_ref[...], preferred_element_type=jnp.float32) + bqkv_ref[...]

    scale = 1.0 / (hs ** 0.5)
    rows = lax.broadcasted_iota(jnp.int32, (M, M), 0)
    cols = lax.broadcasted_iota(jnp.int32, (M, M), 1)
    diag = rows == cols

    for h in range(num_heads):                    # static unroll over heads
        q_h = qkv[:, h * hs:(h + 1) * hs]
        k_h = qkv[:, D + h * hs:D + (h + 1) * hs]
        v_h = qkv[:, 2 * D + h * hs:2 * D + (h + 1) * hs]
        # q @ k^T without an explicit transpose (contract last dims on the MXU)
        s = lax.dot_general(q_h, k_h, (((1,), (1,)), ((), ())),
                            preferred_element_type=jnp.float32) * scale
        s = jnp.where(diag, -jnp.inf, s)          # masked_fill(eye, -inf)
        m = jnp.max(s, axis=-1, keepdims=True)
        e = jnp.exp(s - m)
        a = e / jnp.sum(e, axis=-1, keepdims=True)
        attn_ref[0, h, :, :] = a
        # write head context directly into its lane slice (no concatenate)
        ctx_scr[:, h * hs:(h + 1) * hs] = jnp.dot(
            a, v_h, preferred_element_type=jnp.float32)

    out = jnp.dot(ctx_scr[...], wo_ref[...],
                  preferred_element_type=jnp.float32) + bo_ref[...]
    out_ref[0] = out + x                          # residual


def mhsa(x, p, num_heads):
    """x: (B, M, D) -> (out (B, M, D), attn (B, H, M, M))."""
    B, M, D = x.shape
    H = num_heads

    def full2(shape):
        return pl.BlockSpec(shape, lambda b: (0, 0))

    return pl.pallas_call(
        functools.partial(_mhsa_kernel, num_heads=H),
        grid=(B,),
        in_specs=[
            pl.BlockSpec((1, M, D), lambda b: (b, 0, 0)),   # x
            full2((D, 3 * D)), full2((1, 3 * D)),            # fused qkv proj
            full2((D, D)), full2((1, D)),                    # out proj
            full2((1, D)), full2((1, D)),                    # layernorm gamma/beta
        ],
        out_specs=[
            pl.BlockSpec((1, M, D), lambda b: (b, 0, 0)),
            pl.BlockSpec((1, H, M, M), lambda b: (b, 0, 0, 0)),
        ],
        out_shape=(jax.ShapeDtypeStruct((B, M, D), jnp.float32),
                   jax.ShapeDtypeStruct((B, H, M, M), jnp.float32)),
        scratch_shapes=[pltpu.VMEM((M, D), jnp.float32)],
        compiler_params=pltpu.CompilerParams(dimension_semantics=("parallel",)),
    )(x, p["wqkv"], p["bqkv"], p["wo"], p["bo"], p["ln_g"], p["ln_b"])


def _adj_sinkhorn_kernel(reg_ref, sub_ref, e_ref, et_ref, mask_ref, o_ref,
                         *, n_iters, eps, n_maps):
    """adj = region_attn * (E @ subnet_attn @ E.T * cross-mask); then sinkhorn."""
    E = e_ref[...]                                  # (M, S) one-hot
    ET = et_ref[...]                                # (S, M)
    mask = mask_ref[...]                            # (M, M)
    M = mask.shape[0]
    ones_row = jnp.ones((1, M), jnp.float32)        # for MXU column sums

    for g in range(n_maps):                         # static unroll over L*H maps
        a77 = sub_ref[0, g]                         # (S, S)
        # expand subnet attention onto region pairs with two tiny MXU matmuls
        mult = jnp.dot(jnp.dot(E, a77, preferred_element_type=jnp.float32), ET,
                       preferred_element_type=jnp.float32)
        a = reg_ref[0, g] * (mult * mask) + eps
        for _ in range(n_iters):
            rs = jnp.sum(a, axis=-1, keepdims=True)                     # row sums (XLU)
            a = a / rs
            cs = jnp.dot(ones_row, a, preferred_element_type=jnp.float32)  # col sums (MXU)
            a = a / cs
        o_ref[0, g] = a


def adj_sinkhorn(region_attn, subnet_attn, n_iters=5, eps=1e-6):
    """region_attn: (B,L,H,M,M), subnet_attn: (B,L,H,S,S) -> adj (B,L,H,M,M)."""
    B, L, H, M, _ = region_attn.shape
    S = subnet_attn.shape[-1]
    G = L * H
    reg = region_attn.reshape(B, G, M, M)
    sub = subnet_attn.reshape(B, G, S, S)
    out = pl.pallas_call(
        functools.partial(_adj_sinkhorn_kernel, n_iters=n_iters, eps=eps, n_maps=G),
        grid=(B,),
        in_specs=[
            pl.BlockSpec((1, G, M, M), lambda b: (b, 0, 0, 0)),
            pl.BlockSpec((1, G, S, S), lambda b: (b, 0, 0, 0)),
            pl.BlockSpec((M, S), lambda b: (0, 0)),
            pl.BlockSpec((S, M), lambda b: (0, 0)),
            pl.BlockSpec((M, M), lambda b: (0, 0)),
        ],
        out_specs=pl.BlockSpec((1, G, M, M), lambda b: (b, 0, 0, 0)),
        out_shape=jax.ShapeDtypeStruct((B, G, M, M), jnp.float32),
        compiler_params=pltpu.CompilerParams(dimension_semantics=("parallel",)),
    )(reg, sub, jnp.asarray(_E), jnp.asarray(_ET), jnp.asarray(_CROSS_MASK))
    return out.reshape(B, L, H, M, M)


# ============================ parameter init =================================

def _init_linear(key, din, dout, scale=0.02):
    w = scale * jax.random.normal(key, (din, dout), jnp.float32)
    b = jnp.zeros((1, dout), jnp.float32)
    return w, b


def _init_mhsa(key, d):
    ks = jax.random.split(key, 4)
    wq, bq = _init_linear(ks[0], d, d)
    wk, bk = _init_linear(ks[1], d, d)
    wv, bv = _init_linear(ks[2], d, d)
    wo, bo = _init_linear(ks[3], d, d)
    return {
        "wqkv": jnp.concatenate([wq, wk, wv], axis=1),   # (D, 3D) fused projection
        "bqkv": jnp.concatenate([bq, bk, bv], axis=1),   # (1, 3D)
        "wo": wo, "bo": bo,
        "ln_g": jnp.ones((1, d), jnp.float32),
        "ln_b": jnp.zeros((1, d), jnp.float32),
    }


def init_params(key):
    keys = jax.random.split(key, 6)
    params = {}

    # RegionEmbedder: 1x1 conv (scalar affine) + MLP(185 -> HIDDEN -> EMBD)
    cw, cb = jax.random.normal(keys[5], (2,), jnp.float32)
    params["conv_w"] = 1.0 + 0.02 * cw
    params["conv_b"] = 0.02 * cb
    k0, k1 = jax.random.split(keys[0])
    params["reg_w1"], params["reg_b1"] = _init_linear(k0, INPUT_DIM, HIDDEN)
    params["reg_w2"], params["reg_b2"] = _init_linear(k1, HIDDEN, EMBD)

    # Region MHSA stack
    params["reg_mhsa"] = [_init_mhsa(k, EMBD)
                          for k in jax.random.split(keys[1], LAYERS)]

    # SubnetworkEmbedders: one MLP per subnetwork, packed + zero-padded so all
    # 7 run in a single pallas_call (padding rows of w1 are zero => exact).
    sub_keys = jax.random.split(keys[2], NUM_SUBNETS)
    w1p = np.zeros((NUM_SUBNETS, SUBNET_PAD, HIDDEN), np.float32)
    b1p = np.zeros((NUM_SUBNETS, 1, HIDDEN), np.float32)
    w2p = np.zeros((NUM_SUBNETS, HIDDEN, EMBD), np.float32)
    b2p = np.zeros((NUM_SUBNETS, 1, EMBD), np.float32)
    for s, (dim, k) in enumerate(zip(SUBNET_FLAT_DIMS, sub_keys)):
        ka, kb = jax.random.split(k)
        w1, b1 = _init_linear(ka, dim, HIDDEN)
        w2, b2 = _init_linear(kb, HIDDEN, EMBD)
        w1p[s, :dim, :] = np.asarray(w1)
        b1p[s] = np.asarray(b1)
        w2p[s] = np.asarray(w2)
        b2p[s] = np.asarray(b2)
    params["sub_w1"] = jnp.asarray(w1p)
    params["sub_b1"] = jnp.asarray(b1p)
    params["sub_w2"] = jnp.asarray(w2p)
    params["sub_b2"] = jnp.asarray(b2p)

    # Subnetwork MHSA stack
    params["sub_mhsa"] = [_init_mhsa(k, EMBD)
                          for k in jax.random.split(keys[3], LAYERS)]

    # StepOne head MLP (the head LayerNorm's output is discarded by the
    # reference forward, so no params are needed for it).
    k0, k1 = jax.random.split(keys[4])
    params["out_w1"], params["out_b1"] = _init_linear(k0, EMBD, HIDDEN)
    params["out_w2"], params["out_b2"] = _init_linear(k1, HIDDEN, EMBD)
    return params


# ============================ StepOne forward ================================

def step_one_forward(params, region_corr, subnet_corrs):
    B = region_corr.shape[0]

    # ---------------- RegionEncoder ----------------
    # Fold the 1x1 Conv2d (scalar affine w*x+b) into the first MLP layer:
    #   (cw*x + cb) @ W1 + b1 == x @ (cw*W1) + (cb*colsum(W1) + b1)
    w1_eff = params["conv_w"] * params["reg_w1"]
    b1_eff = params["reg_b1"] + params["conv_b"] * jnp.sum(
        params["reg_w1"], axis=0, keepdims=True)
    x_reg = mlp2(region_corr, w1_eff, b1_eff,
                 params["reg_w2"], params["reg_b2"])          # (B, 185, EMBD)

    x_in = x_reg
    reg_attns = []
    for lp in params["reg_mhsa"]:
        x_in, a = mhsa(x_in, lp, HEADS)
        reg_attns.append(a)
    x0_feat = x_reg + x_in
    x0_attn = jnp.stack(reg_attns, axis=1)                    # (B, L, H, 185, 185)

    # ---------------- SubNetworkEncoder ----------------
    # Pack the ragged subnet features into one zero-padded (S, B, Dpad) slab.
    x_pack = jnp.zeros((NUM_SUBNETS, B, SUBNET_PAD), jnp.float32)
    for s, f in enumerate(subnet_corrs):
        x_pack = x_pack.at[s, :, :f.shape[1]].set(f)
    toks = subnet_mlps(x_pack, params["sub_w1"], params["sub_b1"],
                       params["sub_w2"], params["sub_b2"])    # (S, B, EMBD)
    xs = jnp.transpose(toks, (1, 0, 2))                       # (B, 7, EMBD)

    sub_attns = []
    for lp in params["sub_mhsa"]:
        xs, a = mhsa(xs, lp, HEADS)
        sub_attns.append(a)
    x1_feat = xs
    x1_attn = jnp.stack(sub_attns, axis=1)                    # (B, L, H, 7, 7)

    # ---------------- StepOne head ----------------
    o = jnp.concatenate([x0_feat, x1_feat], axis=1)           # (B, 192, EMBD)
    # NOTE: reference computes self.layer_norm(o) but immediately overwrites it
    # with self.mlp(o); the normalized value is never used, so it is skipped.
    o = mlp2(o, params["out_w1"], params["out_b1"],
             params["out_w2"], params["out_b2"], residual=True)
    o_reg = o[:, :186, :]   # mirrors reference slicing (185 regions + 1st subnet token)
    o_sub = o[:, 186:, :]

    # subNetworkAttendRegions + sinkhorn fused: the (B,L,H,185,185) gathered
    # multiplier is built inside the kernel from (B,L,H,7,7) via E @ a @ E.T.
    adj = adj_sinkhorn(x0_attn, x1_attn, n_iters=5, eps=1e-6)
    return o_reg, o_sub, adj


# ================================= main ======================================

if __name__ == "__main__":
    key = jax.random.PRNGKey(0)
    pkey, dkey = jax.random.split(key)
    params = init_params(pkey)

    dkeys = jax.random.split(dkey, 1 + len(SUBNET_FLAT_DIMS))
    region_corr = jax.random.normal(dkeys[0], (BATCH, NUM_REGIONS, NUM_REGIONS),
                                    jnp.float32)
    subnet_corrs = [jax.random.normal(k, (BATCH, d), jnp.float32)
                    for k, d in zip(dkeys[1:], SUBNET_FLAT_DIMS)]

    o_reg, o_sub, adj = step_one_forward(params, region_corr, subnet_corrs)
    jax.block_until_ready((o_reg, o_sub, adj))

    assert o_reg.shape == (BATCH, 186, EMBD)
    assert o_sub.shape == (BATCH, 192 - 186, EMBD)
    assert adj.shape == (BATCH, LAYERS, HEADS, NUM_REGIONS, NUM_REGIONS)
    assert bool(jnp.all(jnp.isfinite(o_reg)))
    assert bool(jnp.all(jnp.isfinite(o_sub)))
    assert bool(jnp.all(jnp.isfinite(adj)))
    print("KERNEL_OK")
</pallas_src>

<mosaic_0001>
module attributes {stable_mosaic.version = 11 : i64} {
  func.func @_mlp2_kernel(%arg0: i32, %arg1: memref<1x185x185xf32, #tpu.memory_space<vmem>>, %arg2: memref<185x64xf32, #tpu.memory_space<vmem>>, %arg3: memref<1x64xf32, #tpu.memory_space<vmem>>, %arg4: memref<64x32xf32, #tpu.memory_space<vmem>>, %arg5: memref<1x32xf32, #tpu.memory_space<vmem>>, %arg6: memref<1x185x32xf32, #tpu.memory_space<vmem>>) attributes {dimension_semantics = [#tpu.dimension_semantics<parallel>], iteration_bounds = array<i64: 2>, scalar_prefetch = 0 : i64, scratch_operands = 0 : i64, tpu.core_type = #tpu.core_type<tc>, window_params = [{transform_indices = @transform_0, window_bounds = array<i64: 1, 185, 185>}, {pipeline_mode = #tpu.pipeline_mode<synchronous>, transform_indices = @transform_1, window_bounds = array<i64: 185, 64>}, {pipeline_mode = #tpu.pipeline_mode<synchronous>, transform_indices = @transform_2, window_bounds = array<i64: 1, 64>}, {pipeline_mode = #tpu.pipeline_mode<synchronous>, transform_indices = @transform_3, window_bounds = array<i64: 64, 32>}, {pipeline_mode = #tpu.pipeline_mode<synchronous>, transform_indices = @transform_4, window_bounds = array<i64: 1, 32>}, {transform_indices = @transform_5, window_bounds = array<i64: 1, 185, 32>}]} {
    %c0 = arith.constant 0 : index
    %c0_0 = arith.constant 0 : index
    %c0_1 = arith.constant 0 : index
    %0 = vector.load %arg1[%c0, %c0_0, %c0_1] : memref<1x185x185xf32, #tpu.memory_space<vmem>>, vector<1x185x185xf32>
    %1 = vector.shape_cast %0 : vector<1x185x185xf32> to vector<185x185xf32>
    %c0_2 = arith.constant 0 : index
    %c0_3 = arith.constant 0 : index
    %2 = vector.load %arg2[%c0_2, %c0_3] : memref<185x64xf32, #tpu.memory_space<vmem>>, vector<185x64xf32>
    %cst = arith.constant dense<0.000000e+00> : vector<185x64xf32>
    %3 = tpu.matmul %1, %2, %cst {dimension_numbers = #tpu.dot_dimension_numbers<[1], [0], [0], [1], [0, 0, 1, 1], [], []>} : vector<185x185xf32>, vector<185x64xf32>, vector<185x64xf32> -> vector<185x64xf32>
    %c0_4 = arith.constant 0 : index
    %c0_5 = arith.constant 0 : index
    %4 = vector.load %arg3[%c0_4, %c0_5] : memref<1x64xf32, #tpu.memory_space<vmem>>, vector<1x64xf32>
    %5 = vector.broadcast %4 : vector<1x64xf32> to vector<185x64xf32>
    %6 = arith.addf %3, %5 : vector<185x64xf32>
    %cst_6 = arith.constant 0.000000e+00 : f32
    %7 = vector.broadcast %cst_6 : f32 to vector<185x64xf32>
    %8 = arith.maximumf %6, %7 : vector<185x64xf32>
    %c0_7 = arith.constant 0 : index
    %c0_8 = arith.constant 0 : index
    %9 = vector.load %arg4[%c0_7, %c0_8] : memref<64x32xf32, #tpu.memory_space<vmem>>, vector<64x32xf32>
    %cst_9 = arith.constant dense<0.000000e+00> : vector<185x32xf32>
    %10 = tpu.matmul %8, %9, %cst_9 {dimension_numbers = #tpu.dot_dimension_numbers<[1], [0], [0], [1], [0, 0, 1, 1], [], []>} : vector<185x64xf32>, vector<64x32xf32>, vector<185x32xf32> -> vector<185x32xf32>
    %c0_10 = arith.constant 0 : index
    %c0_11 = arith.constant 0 : index
    %11 = vector.load %arg5[%c0_10, %c0_11] : memref<1x32xf32, #tpu.memory_space<vmem>>, vector<1x32xf32>
    %12 = vector.broadcast %11 : vector<1x32xf32> to vector<185x32xf32>
    %13 = arith.addf %10, %12 : vector<185x32xf32>
    %c0_12 = arith.constant 0 : index
    %c0_13 = arith.constant 0 : index
    %c0_14 = arith.constant 0 : index
    %14 = vector.load %arg6[%c0_12, %c0_13, %c0_14] : memref<1x185x32xf32, #tpu.memory_space<vmem>>, vector<1x185x32xf32>
    %15 = vector.shape_cast %14 : vector<1x185x32xf32> to vector<185x32xf32>
    %16 = vector.shape_cast %13 : vector<185x32xf32> to vector<1x185x32xf32>
    tpu.vector_store %arg6[%c0_12, %c0_13, %c0_14], %16 {strides = array<i32>} : memref<1x185x32xf32, #tpu.memory_space<vmem>>, vector<1x185x32xf32>,
    return
  }
  func.func @transform_0(%arg0: i32) -> (i32, i32, i32) {
    %c0_i32 = arith.constant 0 : i32
    %c0_i32_0 = arith.constant 0 : i32
    %c0_i32_1 = arith.constant 0 : i32
    return %arg0, %c0_i32, %c0_i32_0 : i32, i32, i32
  }
  func.func @transform_1(%arg0: i32) -> (i32, i32) {
    %c0_i32 = arith.constant 0 : i32
    %c0_i32_0 = arith.constant 0 : i32
    %c0_i32_1 = arith.constant 0 : i32
    return %c0_i32, %c0_i32_0 : i32, i32
  }
  func.func @transform_2(%arg0: i32) -> (i32, i32) {
    %c0_i32 = arith.constant 0 : i32
    %c0_i32_0 = arith.constant 0 : i32
    %c0_i32_1 = arith.constant 0 : i32
    return %c0_i32, %c0_i32_0 : i32, i32
  }
  func.func @transform_3(%arg0: i32) -> (i32, i32) {
    %c0_i32 = arith.constant 0 : i32
    %c0_i32_0 = arith.constant 0 : i32
    %c0_i32_1 = arith.constant 0 : i32
    return %c0_i32, %c0_i32_0 : i32, i32
  }
  func.func @transform_4(%arg0: i32) -> (i32, i32) {
    %c0_i32 = arith.constant 0 : i32
    %c0_i32_0 = arith.constant 0 : i32
    %c0_i32_1 = arith.constant 0 : i32
    return %c0_i32, %c0_i32_0 : i32, i32
  }
  func.func @transform_5(%arg0: i32) -> (i32, i32, i32) {
    %c0_i32 = arith.constant 0 : i32
    %c0_i32_0 = arith.constant 0 : i32
    %c0_i32_1 = arith.constant 0 : i32
    return %arg0, %c0_i32, %c0_i32_0 : i32, i32, i32
  }
}

</mosaic_0001>

<bundles_post_ra>
// kernel: tpu_custom_call.1
= control target key start
LH: loop header
LB: loop body
LE: loop exit
PB: predicated region body
PF: predicated region fallthrough
CT: control target
= control target key end

     0   :  { %s1217_s18 = smov 0   ;;  %s1581_s0 = inlined_call_operand.vmem [shape: f32[2,185,185], index: 0, kind: input, shape index: {}]   ;;  %s1582_s1 = inlined_call_operand.vmem [shape: f32[185,64], index: 1, kind: input, shape index: {}]   ;;  %s1583_s2 = inlined_call_operand.vmem [shape: f32[1,64], index: 2, kind: input, shape index: {}]   ;;  %s1584_s3 = inlined_call_operand.vmem [shape: f32[64,32], index: 3, kind: input, shape index: {}]   ;;  %s1585_s4 = inlined_call_operand.vmem [shape: f32[1,32], index: 4, kind: input, shape index: {}]   ;;  %s1586_s5 = inlined_call_operand.vmem [shape: f32[2,185,32], index: 5, kind: output, shape index: {}]  }
   0x1 LB: > { %s944_s19 = sadd.s32 4294967295, %s1183_s18   ;;  %p948_p0 = scmp.ge.s32.totalorder %s1183_s18, 1  ;;  %s1183_s18 = sphi %s1217_s18, %s15_s18  }
   0x2   : > { %p187_p1 = scmp.lt.s32.totalorder %s1183_s18, 3 }
   0x4   : > { %p188_p2 = pnand %p948_p0, %p187_p1 }
   0x5   : > { %v273_v0 = vld [vmem:[%s1582_s1] sm:$0xff] (!%p188_p2)  ;;  %v274_v1 = vld [vmem:[%s1582_s1 + $0x8] sm:$0xff] (!%p188_p2)  ;;  %v275_v2 = vld [vmem:[%s1582_s1 + $0x10] sm:$0xff] (!%p188_p2)  ;;  %v1185_v3 = vmov (!%p188_p2), 0.0|0.0   ;;  %p215_p3 = scmp.lt.s32.totalorder (!%p188_p2), %s944_s19, 1  ;;  %vm304_vm0 = vcmask (!%p188_p2), 465920  }
   0x6   : > { %191 = sbr.rel (%p188_p2) target bundleno = 567 (0x237), region = 40  ;;  %1088 = vmatprep.subr.bf16.mxu0 (!%p188_p2), %v1185_v3  ;;  %v1089_v4 = vpack.c.bf16 (!%p188_p2), %v274_v1, %v273_v0  ;;  %v276_v5 = vld [vmem:[%s1582_s1 + $0x18] sm:$0xff] (!%p188_p2)  ;;  %1141 = vmatprep.subr.bf16.mxu1 (!%p188_p2), %v1185_v3  ;;  %v277_v7 = vld [vmem:[%s1582_s1 + $0x20] sm:$0xff] (!%p188_p2)  ;;  %v278_v8 = vld [vmem:[%s1582_s1 + $0x28] sm:$0xff] (!%p188_p2)  ;;  %vm377_vm1 = vcmask (!%p188_p2), 1040384   ;;  %vm1186_vm2 = vmmov (!%p188_p2), 1  }
   0x7   : > { %v1092_v6 = vpack.c.bf16 (!%p188_p2), %v276_v5, %v275_v2  ;;  %v1095_v9 = vpack.c.bf16 (!%p188_p2), %v278_v8, %v277_v7  ;;  %v279_v10 = vld [vmem:[%s1582_s1 + $0x30] sm:$0xff] (!%p188_p2)  ;;  %v280_v11 = vld [vmem:[%s1582_s1 + $0x38] sm:$0xff] (!%p188_p2)  ;;  %v281_v14 = vld [vmem:[%s1582_s1 + $0x40] sm:$0xff] (!%p188_p2)  ;;  %vm605_vm4 = vcmask (!%p188_p2), 523264   ;;  %vm863_vm5 = vcmask (!%p188_p2), 261120  }
   0x8   : > { %1090 = vmatpush1.bf16.msra.mxu0 (!%p188_p2), %v1089_v4  ;;  %1153 = vmatpush1.bf16.msra.mxu1 (!%p188_p2), %v1089_v4  ;;  %v1098_v13 = vpack.c.bf16 (!%p188_p2), %v280_v11, %v279_v10  ;;  %v282_v15 = vld [vmem:[%s1582_s1 + $0x48] sm:$0xff] (!%p188_p2)  ;;  %v283_v17 = vld [vmem:[%s1582_s1 + $0x50] sm:$0xff] (!%p188_p2)  ;;  %v284_v18 = vld [vmem:[%s1582_s1 + $0x58] sm:$0xff] (!%p188_p2)  ;;  %vm887_vm6 = vcmask (!%p188_p2), 253952  }
   0x9   : > { %1091 = vmatprep.subr.bf16.mxu0 (!%p188_p2), %v1185_v3  ;;  %1142 = vmatprep.subr.bf16.mxu1 (!%p188_p2), %v1185_v3  ;;  %v1101_v16 = vpack.c.bf16 (!%p188_p2), %v282_v15, %v281_v14  ;;  %v1104_v20 = vpack.c.bf16 (!%p188_p2), %v284_v18, %v283_v17  ;;  %v285_v21 = vld [vmem:[%s1582_s1 + $0x60] sm:$0xff] (!%p188_p2)  ;;  %v286_v22 = vld [vmem:[%s1582_s1 + $0x68] sm:$0xff] (!%p188_p2)  ;;  %v287_v24 = vld [vmem:[%s1582_s1 + $0x70] sm:$0xff] (!%p188_p2) }
   0xa   : > { %v1107_v23 = vpack.c.bf16 (!%p188_p2), %v286_v22, %v285_v21  ;;  %v288_v25 = vld [vmem:[%s1582_s1 + $0x78] sm:$0xff] (!%p188_p2)  ;;  %v289_v27 = vld [vmem:[%s1582_s1 + $0x80] sm:$0xff] (!%p188_p2)  ;;  %v290_v28 = vld [vmem:[%s1582_s1 + $0x88] sm:$0xff] (!%p188_p2) }
   0xb   : > { %v1110_v26 = vpack.c.bf16 (!%p188_p2), %v288_v25, %v287_v24  ;;  %v1113_v29 = vpack.c.bf16 (!%p188_p2), %v290_v28, %v289_v27  ;;  %v291_v30 = vld [vmem:[%s1582_s1 + $0x90] sm:$0xff] (!%p188_p2)  ;;  %v292_v31 = vld [vmem:[%s1582_s1 + $0x98] sm:$0xff] (!%p188_p2)  ;;  %v293_v33 = vld [vmem:[%s1582_s1 + $0xa0] sm:$0xff] (!%p188_p2) }
   0xc   : > { %1093 = vmatpush1.bf16.msra.mxu0 (!%p188_p2), %v1092_v6  ;;  %1154 = vmatpush1.bf16.msra.mxu1 (!%p188_p2), %v1092_v6  ;;  %v1116_v32 = vpack.c.bf16 (!%p188_p2), %v292_v31, %v291_v30  ;;  %v294_v34 = vld [vmem:[%s1582_s1 + $0xa8] sm:$0xff] (!%p188_p2)  ;;  %v295_v36 = vld [vmem:[%s1582_s1 + $0xb0] sm:$0xff] (!%p188_p2)  ;;  %v296_v37 = vld [vmem:[%s1582_s1 + $0xb8] sm:$0x1] (!%p188_p2) }
   0xd   : > { %s1588_s19 = smov (!%p215_p3, %s944_s19), 1  ;;  %1094 = vmatprep.subr.bf16.mxu0 %v1185_v3  ;;  %1143 = vmatprep.subr.bf16.mxu1 %v1185_v3  ;;  %v1119_v35 = vpack.c.bf16 %v294_v34, %v293_v33  ;;  %v590_v38 = vld [vmem:[%s1584_s3] sm:$0xff]  ;;  %v591_v39 = vld [vmem:[%s1584_s3 + $0x8] sm:$0xff]  ;;  %v1122_v40 = vpack.c.bf16 %v296_v37, %v295_v36  ;;  %vm1123_vm3 = vmpackc.low %vm377_vm1, %vm1186_vm2 }
   0xe   : > { %s1165_s7 = smul.u32 384, %s1588_s19  ;;  %v1125_v41 = vpack.c.bf16 %v591_v39, %v590_v38  ;;  %v592_v42 = vld [vmem:[%s1584_s3 + $0x10] sm:$0xff]  ;;  %v593_v43 = vld [vmem:[%s1584_s3 + $0x18] sm:$0xff]  ;;  %v594_v27 = vld [vmem:[%s1584_s3 + $0x20] sm:$0xff] }
   0xf   : > { %v1129_v48 = vpack.c.bf16 %v593_v43, %v592_v42  ;;  %v595_v28 = vld [vmem:[%s1584_s3 + $0x28] sm:$0xff]  ;;  %v596_v30 = vld [vmem:[%s1584_s3 + $0x30] sm:$0xff]  ;;  %v597_v31 = vld [vmem:[%s1584_s3 + $0x38] sm:$0xff]  ;;  %s1166_s22 = smul.u32 192, %s1588_s19 }
  0x10   : > { %s1253_s10 = scalar_lea.vmem %s1581_s0, %s1165_s7  ;;  %1096 = vmatpush1.bf16.msra.mxu0 %v1095_v9  ;;  %1155 = vmatpush1.bf16.msra.mxu1 %v1095_v9  ;;  %v1428_v33 = vld [vmem:[%s1583_s2] ss:$0 sm:$0xff] }
  0x11   : > { %v226_v12 = vld [vmem:[%s1253_s10 + $0x8] sm:$0xff]  ;;  %1097 = vmatprep.subr.bf16.mxu0 %v1185_v3  ;;  %1144 = vmatprep.subr.bf16.mxu1 %v1185_v3  ;;  %v225_v44 = vld [vmem:[%s1253_s10] sm:$0xff]  ;;  %v228_v46 = vld [vmem:[%s1253_s10 + $0x18] sm:$0xff]  ;;  %s1505_s27 = scalar_lea.vmem %s1586_s5, %s1166_s22 }
  0x12   : > { %953 = vmatprep.mubr.msk.f32.mxu0 %vm304_vm0, %v226_v12  ;;  %v262_v19 = vld [vmem:[%s1253_s10 + $0x128] sm:$0xff]  ;;  %v261_v45 = vld [vmem:[%s1253_s10 + $0x120] sm:$0xff]  ;;  %v264_v47 = vld [vmem:[%s1253_s10 + $0x138] sm:$0xff] }
  0x13   : > { %971 = vmatprep.mubr.msk.f32.mxu1 %vm304_vm0, %v262_v19  ;;  %v227_v49 = vld [vmem:[%s1253_s10 + $0x10] sm:$0xff]  ;;  %v230_v51 = vld [vmem:[%s1253_s10 + $0x28] sm:$0xff]  ;;  %v229_v53 = vld [vmem:[%s1253_s10 + $0x20] sm:$0xff] }
  0x14   : > { %1099 = vmatpush1.bf16.msra.mxu0 %v1098_v13  ;;  %1156 = vmatpush1.bf16.msra.mxu1 %v1098_v13  ;;  %v263_v50 = vld [vmem:[%s1253_s10 + $0x130] sm:$0xff]  ;;  %v266_v52 = vld [vmem:[%s1253_s10 + $0x148] sm:$0xff]  ;;  %v265_v54 = vld [vmem:[%s1253_s10 + $0x140] sm:$0xff] }
  0x15   : > { %1100 = vmatprep.subr.bf16.mxu0 %v1185_v3  ;;  %1145 = vmatprep.subr.bf16.mxu1 %v1185_v3  ;;  %v232_v55 = vld [vmem:[%s1253_s10 + $0x38] sm:$0xff]  ;;  %v231_v57 = vld [vmem:[%s1253_s10 + $0x30] sm:$0xff]  ;;  %v234_v59 = vld [vmem:[%s1253_s10 + $0x48] sm:$0xff] }
  0x16   : > { %v268_v56 = vld [vmem:[%s1253_s10 + $0x158] sm:$0xff]  ;;  %v267_v58 = vld [vmem:[%s1253_s10 + $0x150] sm:$0xff]  ;;  %v270_v60 = vld [vmem:[%s1253_s10 + $0x168] sm:$0xff] }
  0x17   : > { %v233_v61 = vld [vmem:[%s1253_s10 + $0x40] sm:$0xff]  ;;  %v236_v63 = vld [vmem:[%s1253_s10 + $0x58] sm:$0xff]  ;;  %v235_v1 = vld [vmem:[%s1253_s10 + $0x50] sm:$0xff] }
  0x18   : > { %1102 = vmatpush1.bf16.msra.mxu0 %v1101_v16  ;;  %1157 = vmatpush1.bf16.msra.mxu1 %v1101_v16  ;;  %v269_v62 = vld [vmem:[%s1253_s10 + $0x160] sm:$0xff]  ;;  %v272_v0 = vld [vmem:[%s1253_s10 + $0x178] sm:$0x1]  ;;  %v271_v2 = vld [vmem:[%s1253_s10 + $0x170] sm:$0x1] }
  0x19   : > { %1103 = vmatprep.subr.bf16.mxu0 %v1185_v3  ;;  %1146 = vmatprep.subr.bf16.mxu1 %v1185_v3  ;;  %v237_v4 = vld [vmem:[%s1253_s10 + $0x60] sm:$0xff]  ;;  %v240_v5 = vld [vmem:[%s1253_s10 + $0x78] sm:$0xff]  ;;  %v239_v6 = vld [vmem:[%s1253_s10 + $0x70] sm:$0xff] }
  0x1a   : > { %v242_v7 = vld [vmem:[%s1253_s10 + $0x88] sm:$0xff]  ;;  %v241_v8 = vld [vmem:[%s1253_s10 + $0x80] sm:$0xff]  ;;  %v244_v9 = vld [vmem:[%s1253_s10 + $0x98] sm:$0xff] }
  0x1b   : > { %v243_v10 = vld [vmem:[%s1253_s10 + $0x90] sm:$0xff]  ;;  %v246_v11 = vld [vmem:[%s1253_s10 + $0xa8] sm:$0xff]  ;;  %v245_v12 = vld [vmem:[%s1253_s10 + $0xa0] sm:$0xff] }
  0x1c   : > { %1105 = vmatpush1.bf16.msra.mxu0 %v1104_v20  ;;  %1158 = vmatpush1.bf16.msra.mxu1 %v1104_v20  ;;  %v248_v13 = vld [vmem:[%s1253_s10 + $0xb8] sm:$0xff]  ;;  %v247_v14 = vld [vmem:[%s1253_s10 + $0xb0] sm:$0xff]  ;;  %v250_v15 = vld [vmem:[%s1253_s10 + $0xc8] sm:$0xff] }
  0x1d   : > { %1106 = vmatprep.subr.bf16.mxu0 %v1185_v3  ;;  %1147 = vmatprep.subr.bf16.mxu1 %v1185_v3  ;;  %v249_v16 = vld [vmem:[%s1253_s10 + $0xc0] sm:$0xff]  ;;  %v252_v17 = vld [vmem:[%s1253_s10 + $0xd8] sm:$0xff]  ;;  %v251_v18 = vld [vmem:[%s1253_s10 + $0xd0] sm:$0xff] }
  0x1e   : > { %v254_v19 = vld [vmem:[%s1253_s10 + $0xe8] sm:$0xff]  ;;  %v253_v20 = vld [vmem:[%s1253_s10 + $0xe0] sm:$0xff]  ;;  %v256_v21 = vld [vmem:[%s1253_s10 + $0xf8] sm:$0xff] }
  0x1f   : > { %v255_v22 = vld [vmem:[%s1253_s10 + $0xf0] sm:$0xff]  ;;  %v257_v24 = vld [vmem:[%s1253_s10 + $0x100] sm:$0xff]  ;;  %v260_v25 = vld [vmem:[%s1253_s10 + $0x118] sm:$0xff] }
  0x20   : > { %1108 = vmatpush1.bf16.msra.mxu0 %v1107_v23  ;;  %1159 = vmatpush1.bf16.msra.mxu1 %v1107_v23  ;;  %v258_v23 = vld [vmem:[%s1253_s10 + $0x108] sm:$0xff] }
  0x21   : > { %1109 = vmatprep.subr.bf16.mxu0 %v1185_v3  ;;  %1148 = vmatprep.subr.bf16.mxu1 %v1185_v3 }
  0x24   : > { %1111 = vmatpush1.bf16.msra.mxu0 %v1110_v26  ;;  %1160 = vmatpush1.bf16.msra.mxu1 %v1110_v26  ;;  %v259_v26 = vld [vmem:[%s1253_s10 + $0x110] sm:$0xff] }
  0x25   : > { %1112 = vmatprep.subr.bf16.mxu0 %v1185_v3  ;;  %1149 = vmatprep.subr.bf16.mxu1 %v1185_v3 }
  0x28   : > { %1114 = vmatpush1.bf16.msra.mxu0 %v1113_v29  ;;  %1161 = vmatpush1.bf16.msra.mxu1 %v1113_v29  ;;  %v1133_v29 = vpack.c.bf16 %v595_v28, %v594_v27 }
  0x29   : > { %1115 = vmatprep.subr.bf16.mxu0 %v1185_v3  ;;  %1150 = vmatprep.subr.bf16.mxu1 %v1185_v3 }
  0x2c   : > { %1117 = vmatpush1.bf16.msra.mxu0 %v1116_v32  ;;  %1162 = vmatpush1.bf16.msra.mxu1 %v1116_v32  ;;  %v1137_v32 = vpack.c.bf16 %v597_v31, %v596_v30 }
  0x2d   : > { %1118 = vmatprep.subr.bf16.mxu0 %v1185_v3  ;;  %1151 = vmatprep.subr.bf16.mxu1 %v1185_v3 }
  0x30   : > { %1120 = vmatpush1.bf16.msra.mxu0 %v1119_v35  ;;  %1163 = vmatpush1.bf16.msra.mxu1 %v1119_v35 }
  0x31   : > { %1121 = vmatprep.subr.bf16.mxu0 %v1185_v3  ;;  %1152 = vmatprep.subr.bf16.mxu1 %v1185_v3  ;;  %v238_v3 = vld [vmem:[%s1253_s10 + $0x68] sm:$0xff] }
  0x34   : > { %1124 = vmatpush1.bf16.msk.msra.mxu0 %vm1123_vm3, %v1122_v40  ;;  %1164 = vmatpush1.bf16.msk.msra.mxu1 %vm1123_vm3, %v1122_v40 }
  0x35   : > { %1126 = vmatprep.subr.bf16.mxu1 %v1125_v41 }
  0x37   : > { %446 = vmatmul.mubr.f32.vlgmr.msra.gmra.mrb[0].mxu0 %v225_v44  ;;  %536 = vmatmul.mubr.f32.vlgmr.msra.gmra.mrb[0].mxu1 %v261_v45 }
  0x38   : > { %954 = vmatprep.mubr.msk.f32.mxu0 %vm304_vm0, %v228_v46  ;;  %972 = vmatprep.mubr.msk.f32.mxu1 %vm304_vm0, %v264_v47 }
  0x39   : > { %1128 = vmatpush3.bf16.msra.mxu1 %v1125_v41 }
  0x3a   : > { %1130 = vmatprep.subr.bf16.mxu1 %v1129_v48 }
  0x3b   : > { %451 = vmatmul.mubr.f32.gmra.mrb[2].mxu0 %v227_v49  ;;  %541 = vmatmul.mubr.f32.gmra.mrb[2].mxu1 %v263_v50 }
  0x3c   : > { %955 = vmatprep.mubr.msk.f32.mxu0 %vm304_vm0, %v230_v51  ;;  %973 = vmatprep.mubr.msk.f32.mxu1 %vm304_vm0, %v266_v52 }
  0x3d   : > { %1132 = vmatpush3.bf16.msra.mxu1 %v1129_v48 }
  0x3e   : > { %1134 = vmatprep.subr.bf16.mxu1 %v1133_v29 }
  0x3f   : > { %456 = vmatmul.mubr.f32.gmra.mrb[4].mxu0 %v229_v53  ;;  %546 = vmatmul.mubr.f32.gmra.mrb[4].mxu1 %v265_v54 }
  0x40   : > { %956 = vmatprep.mubr.msk.f32.mxu0 %vm304_vm0, %v232_v55  ;;  %974 = vmatprep.mubr.msk.f32.mxu1 %vm304_vm0, %v268_v56 }
  0x41   : > { %1136 = vmatpush3.bf16.msra.mxu1 %v1133_v29 }
  0x42   : > { %1138 = vmatprep.subr.bf16.mxu1 %v1137_v32 }
  0x43   : > { %461 = vmatmul.mubr.f32.gmra.mrb[6].mxu0 %v231_v57  ;;  %551 = vmatmul.mubr.f32.gmra.mrb[6].mxu1 %v267_v58 }
  0x44   : > { %957 = vmatprep.mubr.msk.f32.mxu0 %vm304_vm0, %v234_v59  ;;  %975 = vmatprep.mubr.msk.f32.mxu1 %vm304_vm0, %v270_v60 }
  0x45   : > { %1140 = vmatpush3.bf16.msra.mxu1 %v1137_v32 }
  0x47   : > { %466 = vmatmul.mubr.f32.gmra.mrb[8].mxu0 %v233_v61  ;;  %556 = vmatmul.mubr.f32.gmra.mrb[8].mxu1 %v269_v62 }
  0x48   : > { %958 = vmatprep.mubr.msk.f32.mxu0 %vm304_vm0, %v236_v63  ;;  %976 = vmatprep.mubr.msk.f32.mxu1 %vm304_vm0, %v272_v0 }
  0x4b   : > { %471 = vmatmul.mubr.f32.gmra.mrb[10].mxu0 %v235_v1  ;;  %561 = vmatmul.mubr.f32.gmra.mrb[10].mxu1 %v271_v2 }
  0x4c   : > { %959 = vmatprep.mubr.msk.f32.mxu0 %vm304_vm0, %v238_v3 }
  0x4f   : > { %476 = vmatmul.mubr.f32.gmra.mrb[12].mxu0 %v237_v4 }
  0x50   : > { %960 = vmatprep.mubr.msk.f32.mxu0 %vm304_vm0, %v240_v5 }
  0x53   : > { %481 = vmatmul.mubr.f32.gmra.mrb[14].mxu0 %v239_v6 }
  0x54   : > { %961 = vmatprep.mubr.msk.f32.mxu0 %vm304_vm0, %v242_v7 }
  0x57   : > { %486 = vmatmul.mubr.f32.gmra.mrb[16].mxu0 %v241_v8 }
  0x58   : > { %962 = vmatprep.mubr.msk.f32.mxu0 %vm304_vm0, %v244_v9 }
  0x5b   : > { %491 = vmatmul.mubr.f32.gmra.mrb[18].mxu0 %v243_v10 }
  0x5c   : > { %963 = vmatprep.mubr.msk.f32.mxu0 %vm304_vm0, %v246_v11 }
  0x5f   : > { %496 = vmatmul.mubr.f32.gmra.mrb[20].mxu0 %v245_v12 }
  0x60   : > { %964 = vmatprep.mubr.msk.f32.mxu0 %vm304_vm0, %v248_v13 }
  0x63   : > { %501 = vmatmul.mubr.f32.gmra.mrb[22].mxu0 %v247_v14 }
  0x64   : > { %965 = vmatprep.mubr.msk.f32.mxu0 %vm304_vm0, %v250_v15 }
  0x67   : > { %506 = vmatmul.mubr.f32.gmra.mrb[24].mxu0 %v249_v16 }
  0x68   : > { %966 = vmatprep.mubr.msk.f32.mxu0 %vm304_vm0, %v252_v17 }
  0x6b   : > { %511 = vmatmul.mubr.f32.gmra.mrb[26].mxu0 %v251_v18 }
  0x6c   : > { %967 = vmatprep.mubr.msk.f32.mxu0 %vm304_vm0, %v254_v19 }
  0x6f   : > { %516 = vmatmul.mubr.f32.gmra.mrb[28].mxu0 %v253_v20 }
  0x70   : > { %968 = vmatprep.mubr.msk.f32.mxu0 %vm304_vm0, %v256_v21 }
  0x73   : > { %521 = vmatmul.mubr.f32.gmra.mrb[30].mxu0 %v255_v22 }
  0x74   : > { %969 = vmatprep.mubr.msk.f32.mxu0 %vm304_vm0, %v258_v23 }
  0x77   : > { %526 = vmatmul.mubr.f32.gmra.mrb[32].mxu0 %v257_v24 }
  0x78   : > { %970 = vmatprep.mubr.msk.f32.mxu0 %vm304_vm0, %v260_v25 }
  0x7b   : > { %531 = vmatmul.mubr.f32.gmra.mrb[34].mxu0 %v259_v26 }
 0x10a   : > { %v447_v34 = vpop.f32.mrb[0].mxu0  ;;  %v1430_v35 = vpop.f32.mrb[0].mxu1 }
 0x10b   : > { %v448_v36 = vadd.f32 %v1428_v33, %v447_v34  ;;  %v449_v37 = vpop.f32.mrb[1].mxu0  ;;  %v539_v38 = vpop.f32.mrb[1].mxu1 }
 0x10d   : > { %v566_v39 = vmax.f32 %v448_v36, 0.0 }
 0x10e   : > { %v452_v40 = vpop.f32.mrb[2].mxu0  ;;  %v1433_v41 = vpop.f32.mrb[2].mxu1 }
 0x10f   : > { %v453_v42 = vadd.f32 %v1428_v33, %v452_v40  ;;  %v454_v43 = vpop.f32.mrb[3].mxu0  ;;  %1052 = vmatprep.mubr.msk.f32.mxu1 %vm605_vm4, %v566_v39  ;;  %v544_v44 = vpop.f32.mrb[3].mxu1 }
 0x111   : > { %v567_v45 = vmax.f32 %v453_v42, 0.0 }
 0x112   : > { %v457_v46 = vpop.f32.mrb[4].mxu0  ;;  %v1437_v47 = vpop.f32.mrb[4].mxu1 }
 0x113   : > { %v458_v48 = vadd.f32 %v1428_v33, %v457_v46  ;;  %v459_v49 = vpop.f32.mrb[5].mxu0  ;;  %1053 = vmatmul.mubr.msk.f32.vlgmr.msra.gmra.mrb[12].mxu1 %vm605_vm4, %v567_v45  ;;  %v549_v50 = vpop.f32.mrb[5].mxu1 }
 0x115   : > { %v568_v51 = vmax.f32 %v458_v48, 0.0 }
 0x116   : > { %v462_v52 = vpop.f32.mrb[6].mxu0  ;;  %v1441_v53 = vpop.f32.mrb[6].mxu1 }
 0x117   : > { %v463_v54 = vadd.f32 %v1428_v33, %v462_v52  ;;  %v464_v55 = vpop.f32.mrb[7].mxu0  ;;  %1055 = vmatprep.mubr.msk.f32.mxu1 %vm605_vm4, %v568_v51  ;;  %v554_v56 = vpop.f32.mrb[7].mxu1 }
 0x118   : > { %v538_v55 = vadd.f32 %v1428_v33, %v1430_v35 }
 0x119   : > { %v569_v57 = vmax.f32 %v463_v54, 0.0 }
 0x11a   : > { %v467_v58 = vpop.f32.mrb[8].mxu0  ;;  %v1445_v59 = vpop.f32.mrb[8].mxu1 }
 0x11b   : > { %v468_v60 = vadd.f32 %v1428_v33, %v467_v58  ;;  %v469_v61 = vpop.f32.mrb[9].mxu0  ;;  %1056 = vmatmul.mubr.msk.f32.gmra.mrb[14].mxu1 %vm605_vm4, %v569_v57  ;;  %v559_v62 = vpop.f32.mrb[9].mxu1  ;;  %v558_v35 = vadd.f32 %v1428_v33, %v1445_v59 }
 0x11c   : > { %v584_v62 = vmax.f32 %v538_v55, 0.0 }
 0x11d   : > { %v570_v63 = vmax.f32 %v468_v60, 0.0  ;;  %v543_v60 = vadd.f32 %v1428_v33, %v1433_v41 }
 0x11e   : > { %v472_v0 = vpop.f32.mrb[10].mxu0  ;;  %v1449_v1 = vpop.f32.mrb[10].mxu1 }
 0x11f   : > { %v473_v2 = vadd.f32 %v1428_v33, %v472_v0  ;;  %v474_v3 = vpop.f32.mrb[11].mxu0  ;;  %1058 = vmatprep.mubr.msk.f32.mxu1 %vm605_vm4, %v570_v63  ;;  %v564_v4 = vpop.f32.mrb[11].mxu1  ;;  %v548_v63 = vadd.f32 %v1428_v33, %v1437_v47  ;;  %v585_v0 = vmax.f32 %v543_v60, 0.0  ;;  %v563_v41 = vadd.f32 %v1428_v33, %v1449_v1 }
 0x120   : > { %v588_v4 = vmax.f32 %v558_v35, 0.0 }
 0x121   : > { %v571_v5 = vmax.f32 %v473_v2, 0.0  ;;  %v553_v2 = vadd.f32 %v1428_v33, %v1441_v53  ;;  %v586_v3 = vmax.f32 %v548_v63, 0.0  ;;  %v1500_v53 = vld [vmem:[%s1585_s4] ss:$0 sm:$0xff] }
 0x122   : > { %v477_v6 = vpop.f32.mrb[12].mxu0 }
 0x123   : > { %v478_v7 = vadd.f32 %v1428_v33, %v477_v6  ;;  %v479_v8 = vpop.f32.mrb[13].mxu0  ;;  %1059 = vmatmul.mubr.msk.f32.gmra.mrb[16].mxu1 %vm605_vm4, %v571_v5  ;;  %v587_v47 = vmax.f32 %v553_v2, 0.0  ;;  %v589_v5 = vmax.f32 %v563_v41, 0.0 }
 0x125   : > { %v572_v9 = vmax.f32 %v478_v7, 0.0 }
 0x126   : > { %v482_v10 = vpop.f32.mrb[14].mxu0 }
 0x127   : > { %v483_v11 = vadd.f32 %v1428_v33, %v482_v10  ;;  %v484_v12 = vpop.f32.mrb[15].mxu0  ;;  %1061 = vmatprep.mubr.msk.f32.mxu1 %vm605_vm4, %v572_v9 }
 0x129   : > { %v573_v13 = vmax.f32 %v483_v11, 0.0 }
 0x12a   : > { %v487_v14 = vpop.f32.mrb[16].mxu0 }
 0x12b   : > { %v488_v15 = vadd.f32 %v1428_v33, %v487_v14  ;;  %v489_v16 = vpop.f32.mrb[17].mxu0  ;;  %1062 = vmatmul.mubr.msk.f32.gmra.mrb[18].mxu1 %vm605_vm4, %v573_v13 }
 0x12d   : > { %v574_v17 = vmax.f32 %v488_v15, 0.0 }
 0x12e   : > { %v492_v18 = vpop.f32.mrb[18].mxu0 }
 0x12f   : > { %v493_v19 = vadd.f32 %v1428_v33, %v492_v18  ;;  %v494_v20 = vpop.f32.mrb[19].mxu0  ;;  %1064 = vmatprep.mubr.msk.f32.mxu1 %vm605_vm4, %v574_v17 }
 0x131   : > { %v575_v21 = vmax.f32 %v493_v19, 0.0 }
 0x132   : > { %v497_v22 = vpop.f32.mrb[20].mxu0 }
 0x133   : > { %v498_v23 = vadd.f32 %v1428_v33, %v497_v22  ;;  %v499_v24 = vpop.f32.mrb[21].mxu0  ;;  %1065 = vmatmul.mubr.msk.f32.gmra.mrb[20].mxu1 %vm605_vm4, %v575_v21 }
 0x135   : > { %v576_v25 = vmax.f32 %v498_v23, 0.0 }
 0x136   : > { %v502_v26 = vpop.f32.mrb[22].mxu0 }
 0x137   : > { %v503_v27 = vadd.f32 %v1428_v33, %v502_v26  ;;  %v504_v28 = vpop.f32.mrb[23].mxu0  ;;  %1067 = vmatprep.mubr.msk.f32.mxu1 %vm605_vm4, %v576_v25 }
 0x139   : > { %v577_v29 = vmax.f32 %v503_v27, 0.0 }
 0x13a   : > { %v507_v30 = vpop.f32.mrb[24].mxu0 }
 0x13b   : > { %v508_v31 = vadd.f32 %v1428_v33, %v507_v30  ;;  %v509_v32 = vpop.f32.mrb[25].mxu0  ;;  %1068 = vmatmul.mubr.msk.f32.gmra.mrb[22].mxu1 %vm605_vm4, %v577_v29 }
 0x13d   : > { %v578_v34 = vmax.f32 %v508_v31, 0.0 }
 0x13e   : > { %v512_v36 = vpop.f32.mrb[26].mxu0 }
 0x13f   : > { %v513_v37 = vadd.f32 %v1428_v33, %v512_v36  ;;  %v514_v38 = vpop.f32.mrb[27].mxu0  ;;  %1070 = vmatprep.mubr.msk.f32.mxu1 %vm605_vm4, %v578_v34 }
 0x141   : > { %v579_v39 = vmax.f32 %v513_v37, 0.0 }
 0x142   : > { %v517_v40 = vpop.f32.mrb[28].mxu0 }
 0x143   : > { %v518_v42 = vadd.f32 %v1428_v33, %v517_v40  ;;  %v519_v43 = vpop.f32.mrb[29].mxu0  ;;  %1071 = vmatmul.mubr.msk.f32.gmra.mrb[24].mxu1 %vm605_vm4, %v579_v39 }
 0x145   : > { %v580_v44 = vmax.f32 %v518_v42, 0.0 }
 0x146   : > { %v522_v45 = vpop.f32.mrb[30].mxu0 }
 0x147   : > { %v523_v46 = vadd.f32 %v1428_v33, %v522_v45  ;;  %v524_v48 = vpop.f32.mrb[31].mxu0  ;;  %1073 = vmatprep.mubr.msk.f32.mxu1 %vm605_vm4, %v580_v44 }
 0x149   : > { %v581_v49 = vmax.f32 %v523_v46, 0.0 }
 0x14a   : > { %v527_v50 = vpop.f32.mrb[32].mxu0 }
 0x14b   : > { %v528_v51 = vadd.f32 %v1428_v33, %v527_v50  ;;  %v529_v52 = vpop.f32.mrb[33].mxu0  ;;  %1074 = vmatmul.mubr.msk.f32.gmra.mrb[26].mxu1 %vm605_vm4, %v581_v49 }
 0x14d   : > { %v582_v54 = vmax.f32 %v528_v51, 0.0 }
 0x14e   : > { %v532_v56 = vpop.f32.mrb[34].mxu0 }
 0x14f   : > { %v533_v57 = vadd.f32 %v1428_v33, %v532_v56  ;;  %v534_v58 = vpop.f32.mrb[35].mxu0  ;;  %1076 = vmatprep.mubr.msk.f32.mxu1 %vm605_vm4, %v582_v54 }
 0x151   : > { %v583_v61 = vmax.f32 %v533_v57, 0.0 }
 0x153   : > { %1077 = vmatmul.mubr.msk.f32.gmra.mrb[28].mxu1 %vm605_vm4, %v583_v61 }
 0x154   : > { %1079 = vmatprep.mubr.msk.f32.mxu1 %vm605_vm4, %v584_v62 }
 0x157   : > { %1080 = vmatmul.mubr.msk.f32.gmra.mrb[30].mxu1 %vm605_vm4, %v585_v0 }
 0x158   : > { %1082 = vmatprep.mubr.msk.f32.mxu1 %vm605_vm4, %v586_v3 }
 0x15b   : > { %1083 = vmatmul.mubr.msk.f32.gmra.mrb[32].mxu1 %vm605_vm4, %v587_v47 }
 0x15c   : > { %1085 = vmatprep.mubr.msk.f32.mxu1 %vm605_vm4, %v588_v4 }
 0x15f   : > { %1086 = vmatmul.mubr.msk.f32.gmra.mrb[34].mxu1 %vm605_vm4, %v589_v5 }
 0x1e6   : > { %v1054_v33 = vpop.f32.mrb[12].mxu1 }
 0x1e7   : > { %v750_v59 = vadd.f32 %v1054_v33, %v1500_v53  ;;  %v744_v1 = vpop.f32.mrb[13].mxu1 }
 0x1e8   : > { %v745_v6 = vadd.f32 %v1500_v53, %v744_v1 }
 0x1e9   : > { %865 = vst.msk [vmem:[%s1505_s27 + $0x8] sm:$0xff] %vm863_vm5, %v750_v59 }
 0x1ea   : > { %864 = vst.msk [vmem:[%s1505_s27] sm:$0xff] %vm863_vm5, %v745_v6 }
 0x1ee   : > { %v1057_v7 = vpop.f32.mrb[14].mxu1 }
 0x1ef   : > { %v760_v8 = vadd.f32 %v1057_v7, %v1500_v53  ;;  %v754_v9 = vpop.f32.mrb[15].mxu1 }
 0x1f0   : > { %v755_v10 = vadd.f32 %v1500_v53, %v754_v9 }
 0x1f1   : > { %867 = vst.msk [vmem:[%s1505_s27 + $0x18] sm:$0xff] %vm863_vm5, %v760_v8 }
 0x1f2   : > { %866 = vst.msk [vmem:[%s1505_s27 + $0x10] sm:$0xff] %vm863_vm5, %v755_v10 }
 0x1f6   : > { %v1060_v11 = vpop.f32.mrb[16].mxu1 }
 0x1f7   : > { %v770_v12 = vadd.f32 %v1060_v11, %v1500_v53  ;;  %v764_v13 = vpop.f32.mrb[17].mxu1 }
 0x1f8   : > { %v765_v14 = vadd.f32 %v1500_v53, %v764_v13 }
 0x1f9   : > { %869 = vst.msk [vmem:[%s1505_s27 + $0x28] sm:$0xff] %vm863_vm5, %v770_v12 }
 0x1fa   : > { %868 = vst.msk [vmem:[%s1505_s27 + $0x20] sm:$0xff] %vm863_vm5, %v765_v14 }
 0x1fe   : > { %v1063_v15 = vpop.f32.mrb[18].mxu1 }
 0x1ff   : > { %v780_v16 = vadd.f32 %v1063_v15, %v1500_v53  ;;  %v774_v17 = vpop.f32.mrb[19].mxu1 }
 0x200   : > { %v775_v18 = vadd.f32 %v1500_v53, %v774_v17 }
 0x201   : > { %871 = vst.msk [vmem:[%s1505_s27 + $0x38] sm:$0xff] %vm863_vm5, %v780_v16 }
 0x202   : > { %870 = vst.msk [vmem:[%s1505_s27 + $0x30] sm:$0xff] %vm863_vm5, %v775_v18 }
 0x206   : > { %v1066_v19 = vpop.f32.mrb[20].mxu1 }
 0x207   : > { %v790_v20 = vadd.f32 %v1066_v19, %v1500_v53  ;;  %v784_v21 = vpop.f32.mrb[21].mxu1 }
 0x208   : > { %v785_v22 = vadd.f32 %v1500_v53, %v784_v21 }
 0x209   : > { %873 = vst.msk [vmem:[%s1505_s27 + $0x48] sm:$0xff] %vm863_vm5, %v790_v20 }
 0x20a   : > { %872 = vst.msk [vmem:[%s1505_s27 + $0x40] sm:$0xff] %vm863_vm5, %v785_v22 }
 0x20e   : > { %v1069_v23 = vpop.f32.mrb[22].mxu1 }
 0x20f   : > { %v800_v24 = vadd.f32 %v1069_v23, %v1500_v53  ;;  %v794_v25 = vpop.f32.mrb[23].mxu1 }
 0x210   : > { %v795_v26 = vadd.f32 %v1500_v53, %v794_v25 }
 0x211   : > { %875 = vst.msk [vmem:[%s1505_s27 + $0x58] sm:$0xff] %vm863_vm5, %v800_v24 }
 0x212   : > { %874 = vst.msk [vmem:[%s1505_s27 + $0x50] sm:$0xff] %vm863_vm5, %v795_v26 }
 0x216   : > { %v1072_v27 = vpop.f32.mrb[24].mxu1 }
 0x217   : > { %v810_v28 = vadd.f32 %v1072_v27, %v1500_v53  ;;  %v804_v29 = vpop.f32.mrb[25].mxu1 }
 0x218   : > { %v805_v30 = vadd.f32 %v1500_v53, %v804_v29 }
 0x219   : > { %877 = vst.msk [vmem:[%s1505_s27 + $0x68] sm:$0xff] %vm863_vm5, %v810_v28 }
 0x21a   : > { %876 = vst.msk [vmem:[%s1505_s27 + $0x60] sm:$0xff] %vm863_vm5, %v805_v30 }
 0x21e   : > { %v1075_v31 = vpop.f32.mrb[26].mxu1 }
 0x21f   : > { %v820_v32 = vadd.f32 %v1075_v31, %v1500_v53  ;;  %v814_v34 = vpop.f32.mrb[27].mxu1 }
 0x220   : > { %v815_v36 = vadd.f32 %v1500_v53, %v814_v34 }
 0x221   : > { %879 = vst.msk [vmem:[%s1505_s27 + $0x78] sm:$0xff] %vm863_vm5, %v820_v32 }
 0x222   : > { %878 = vst.msk [vmem:[%s1505_s27 + $0x70] sm:$0xff] %vm863_vm5, %v815_v36 }
 0x226   : > { %v1078_v37 = vpop.f32.mrb[28].mxu1 }
 0x227   : > { %v830_v38 = vadd.f32 %v1078_v37, %v1500_v53  ;;  %v824_v39 = vpop.f32.mrb[29].mxu1 }
 0x228   : > { %v825_v40 = vadd.f32 %v1500_v53, %v824_v39 }
 0x229   : > { %881 = vst.msk [vmem:[%s1505_s27 + $0x88] sm:$0xff] %vm863_vm5, %v830_v38 }
 0x22a   : > { %880 = vst.msk [vmem:[%s1505_s27 + $0x80] sm:$0xff] %vm863_vm5, %v825_v40  ;;  %v1081_v42 = vpop.f32.mrb[30].mxu1 }
 0x22b   : > { %v840_v43 = vadd.f32 %v1081_v42, %v1500_v53  ;;  %v834_v44 = vpop.f32.mrb[31].mxu1 }
 0x22c   : > { %v835_v45 = vadd.f32 %v1500_v53, %v834_v44 }
 0x22d   : > { %883 = vst.msk [vmem:[%s1505_s27 + $0x98] sm:$0xff] %vm863_vm5, %v840_v43 }
 0x22e   : > { %882 = vst.msk [vmem:[%s1505_s27 + $0x90] sm:$0xff] %vm863_vm5, %v835_v45  ;;  %v1084_v46 = vpop.f32.mrb[32].mxu1 }
 0x22f   : > { %v850_v48 = vadd.f32 %v1084_v46, %v1500_v53  ;;  %v844_v49 = vpop.f32.mrb[33].mxu1 }
 0x230   : > { %v845_v50 = vadd.f32 %v1500_v53, %v844_v49 }
 0x231   : > { %885 = vst.msk [vmem:[%s1505_s27 + $0xa8] sm:$0xff] %vm863_vm5, %v850_v48 }
 0x232   : > { %884 = vst.msk [vmem:[%s1505_s27 + $0xa0] sm:$0xff] %vm863_vm5, %v845_v50  ;;  %v1087_v51 = vpop.f32.mrb[34].mxu1 }
 0x233   : > { %v860_v52 = vadd.f32 %v1087_v51, %v1500_v53  ;;  %v854_v54 = vpop.f32.mrb[35].mxu1 }
 0x234   : > { %v855_v55 = vadd.f32 %v1500_v53, %v854_v54 }
 0x235   : > { %888 = vst.msk [vmem:[%s1505_s27 + $0xb8] sm:$0x1] %vm887_vm6, %v860_v52 }
 0x236   : > { %886 = vst.msk [vmem:[%s1505_s27 + $0xb0] sm:$0xff] %vm863_vm5, %v855_v55 }
 0x237 PF: > { %s15_s18 = sadd.s32 1, %s1183_s18  }
 0x238   : > { %p12_p4 = scmp.ge.s32.totalorder %s15_s18, 4  }
 0x23a   :  { %14 = sbr.rel (!%p12_p4) target bundleno = 1 (0x1), region = 70 }

</bundles_post_ra>
